<compile_context>
chip_gen: v7x
topology: tpu7x:2x2x1
jax: 0.10.0
libtpu: 0.0.40
codegen_flags: <defaults>
</compile_context>

<pallas_src>
import functools

import jax
import jax.numpy as jnp
from jax.experimental import pallas as pl
from jax.experimental.pallas import tpu as pltpu


def _round_up(x, m):
    return ((x + m - 1) // m) * m


def _dice_partial_kernel(score_ref, tgt_ref, inter_ref, ssq_ref, cnt_ref,
                         inter_acc, ssq_acc, cnt_acc, *,
                         n_classes, hw, tile_p, num_tiles, fuse_softmax):
    """Accumulates per-class dice partial sums for one (batch, pixel-tile).

    score_ref: VMEM (1, C, TILE_P)  predictions (any float dtype)
    tgt_ref:   VMEM (1, 1, TILE_P)  integer labels (any <=32-bit int dtype)
    inter/ssq/cnt_ref: VMEM (1, C, 1) f32 per-batch results (written once,
                       at the last pixel tile)
    inter/ssq/cnt_acc: VMEM (C, TILE_P) f32 scratch accumulators
    """
    t = pl.program_id(1)

    # Scratch accumulators persist across grid steps; zero them at the first
    # pixel tile of every batch element (t is the fastest-varying grid axis).
    @pl.when(t == 0)
    def _():
        inter_acc[...] = jnp.zeros_like(inter_acc)
        ssq_acc[...] = jnp.zeros_like(ssq_acc)
        cnt_acc[...] = jnp.zeros_like(cnt_acc)

    def accumulate(masked):
        s = score_ref[0].astype(jnp.float32)            # (C, TILE_P)
        labels = tgt_ref[0].astype(jnp.int32)           # (1, TILE_P)

        if fuse_softmax:
            # Fused per-pixel softmax over classes. exp goes to the EUP slot;
            # the divide is replaced by a (1, TILE_P) reciprocal + multiply.
            m = jnp.max(s, axis=0, keepdims=True)
            e = jnp.exp(s - m)
            inv = pl.reciprocal(jnp.sum(e, axis=0, keepdims=True), approx=False)
            s = e * inv

        # One-hot for all classes at once via broadcast compare.
        cls = jax.lax.broadcasted_iota(jnp.int32, (n_classes, 1), 0)
        onehot = labels == cls                          # (C, TILE_P) bool

        if masked:
            # Only the (partial) last tile pays for lane masking. Masking is
            # applied AFTER the softmax (softmax(0) != 0); jnp.where also
            # squashes any NaN/Inf coming from padded OOB lanes.
            lane = jax.lax.broadcasted_iota(jnp.int32, (1, tile_p), 1)
            valid = (t * tile_p + lane) < hw            # (1, TILE_P)
            s = jnp.where(valid, s, 0.0)
            onehot = jnp.logical_and(onehot, valid)

        # Full-width VPU accumulation; no cross-lane work in the hot loop.
        inter_acc[...] += jnp.where(onehot, s, 0.0)     # sum(score * onehot)
        ssq_acc[...] += s * s                           # sum(score * score)
        cnt_acc[...] += onehot.astype(jnp.float32)      # sum(onehot)

    has_tail = (hw % tile_p) != 0
    if not has_tail:
        accumulate(masked=False)
    else:
        @pl.when(t < num_tiles - 1)
        def _():
            accumulate(masked=False)

        @pl.when(t == num_tiles - 1)
        def _():
            accumulate(masked=True)

    # Finalize: one cross-lane reduce + narrow store per batch element.
    @pl.when(t == num_tiles - 1)
    def _():
        inter_ref[...] = jnp.sum(inter_acc[...], axis=-1, keepdims=True)[None]
        ssq_ref[...] = jnp.sum(ssq_acc[...], axis=-1, keepdims=True)[None]
        cnt_ref[...] = jnp.sum(cnt_acc[...], axis=-1, keepdims=True)[None]


def dice_loss(inputs, target, n_classes, *, weight=None, softmax=False,
              argmax=False, tile_hint=None):
    """Pallas-backed equivalent of DiceLoss.forward (one_hot=True path).

    inputs: (N, C, H, W) float predictions (probabilities, or logits if
            softmax=True -- the softmax is fused into the kernel)
    target: (N, H, W) integer labels  (or (N, C, H, W) logits if argmax=True)
    """
    if argmax:
        target = jnp.argmax(target, axis=1)

    N, C, H, W = inputs.shape
    assert C == n_classes
    hw = H * W

    # Free reshapes only (contiguous collapse) -- no host-side transpose and
    # no host-side label widening (cast happens in-kernel).
    score = inputs.reshape(N, C, hw)
    if (not jnp.issubdtype(target.dtype, jnp.integer)
            or jnp.dtype(target.dtype).itemsize > 4):
        target = target.astype(jnp.int32)
    labels = target.reshape(N, 1, hw)

    # Pixel tile: ~2 MiB of score bytes per grid step (amortizes the ~0.35us
    # fixed step overhead), multiple of 128, capped so the double-buffered
    # inputs + 3 f32 scratch accumulators stay well under the VMEM limit on
    # every chip (incl. v7x's 64 MiB physical VMEM).
    score_isz = jnp.dtype(score.dtype).itemsize
    label_isz = jnp.dtype(labels.dtype).itemsize
    target_block_bytes = 2 << 20
    tile_p = max(128, (target_block_bytes // max(1, C * score_isz)) // 128 * 128)
    tile_p = min(tile_p, 64 * 1024)
    tile_p = min(tile_p, _round_up(hw, 128))
    if tile_hint is not None:
        tile_p = min(tile_p, max(128, _round_up(tile_hint, 128)))
    num_tiles = pl.cdiv(hw, tile_p)

    # Explicit VMEM budget: double-buffered inputs + scratch + temp headroom.
    est_vmem = (2 * C * tile_p * score_isz + 2 * tile_p * label_isz
                + 3 * C * tile_p * 4 + 4 * C * tile_p * 4 + (1 << 20))
    vmem_limit = int(min(40 << 20, max(16 << 20, 2 * est_vmem)))

    out_shape = jax.ShapeDtypeStruct((N, C, 1), jnp.float32)
    acc_spec = pl.BlockSpec((1, C, 1), lambda n, t: (n, 0, 0))

    inter, ssq, cnt = pl.pallas_call(
        functools.partial(_dice_partial_kernel, n_classes=n_classes, hw=hw,
                          tile_p=tile_p, num_tiles=num_tiles,
                          fuse_softmax=softmax),
        out_shape=(out_shape, out_shape, out_shape),
        grid_spec=pltpu.PrefetchScalarGridSpec(
            num_scalar_prefetch=0,
            grid=(N, num_tiles),
            in_specs=[
                pl.BlockSpec((1, C, tile_p), lambda n, t: (n, 0, t)),
                pl.BlockSpec((1, 1, tile_p), lambda n, t: (n, 0, t)),
            ],
            out_specs=[acc_spec, acc_spec, acc_spec],
            scratch_shapes=[
                pltpu.VMEM((C, tile_p), jnp.float32),
                pltpu.VMEM((C, tile_p), jnp.float32),
                pltpu.VMEM((C, tile_p), jnp.float32),
            ]),
        compiler_params=pltpu.CompilerParams(
            dimension_semantics=("parallel", "arbitrary"),
            vmem_limit_bytes=vmem_limit),
    )(score, labels)

    # Tiny JAX epilogue: combine per-batch partials, divide, weight, average.
    inter_c = jnp.sum(inter[:, :, 0], axis=0)        # (C,)
    ssq_c = jnp.sum(ssq[:, :, 0], axis=0)            # (C,)
    cnt_c = jnp.sum(cnt[:, :, 0], axis=0)            # (C,)
    smooth = 1e-10
    dice = 1.0 - (2.0 * inter_c + smooth) / (ssq_c + cnt_c + smooth)

    if weight is None:
        weight = [1.0] * n_classes
    w = jnp.asarray(weight, dtype=jnp.float32)
    return jnp.sum(dice * w) / n_classes


def _dice_loss_ref(inputs, target, n_classes, weight=None):
    """Pure-JAX reference mirroring the PyTorch module (one_hot=True path)."""
    smooth = 1e-10
    onehot = jax.nn.one_hot(target, n_classes, axis=1, dtype=jnp.float32)
    if weight is None:
        weight = [1.0] * n_classes
    loss = 0.0
    for i in range(n_classes):
        s = inputs[:, i].astype(jnp.float32)
        t = onehot[:, i]
        inter = 2.0 * jnp.sum(s * t) + smooth
        union = jnp.sum(s * s) + jnp.sum(t * t) + smooth
        loss = loss + (1.0 - inter / union) * weight[i]
    return loss / n_classes


if __name__ == "__main__":
    key = jax.random.PRNGKey(0)
    k1, k2, k3, k4 = jax.random.split(key, 4)

    N, C, H, W = 2, 4, 16, 16
    logits = jax.random.normal(k1, (N, C, H, W), dtype=jnp.float32)
    probs = jax.nn.softmax(logits, axis=1)                  # soft predictions
    labels = jax.random.randint(k2, (N, H, W), 0, C, dtype=jnp.int32)

    # 1) Default path: probabilities in, one-hot targets built in-kernel.
    loss = jax.block_until_ready(dice_loss(probs, labels, n_classes=C))
    ref = jax.block_until_ready(_dice_loss_ref(probs, labels, C))
    assert jnp.allclose(loss, ref, rtol=1e-5, atol=1e-6), (loss, ref)

    # 2) Fused-softmax path: logits in, softmax computed inside the kernel.
    loss_sm = jax.block_until_ready(
        dice_loss(logits, labels, n_classes=C, softmax=True))
    assert jnp.allclose(loss_sm, ref, rtol=1e-5, atol=1e-5), (loss_sm, ref)

    # 3) Multi-tile + partial last tile (exercises the masked tail branch and
    #    the scratch-accumulator re-zeroing across batch elements).
    H2 = W2 = 18
    logits2 = jax.random.normal(k3, (N, C, H2, W2), dtype=jnp.float32)
    probs2 = jax.nn.softmax(logits2, axis=1)
    labels2 = jax.random.randint(k4, (N, H2, W2), 0, C, dtype=jnp.int8)
    wts = [0.5, 1.0, 2.0, 1.5]
    loss2 = jax.block_until_ready(
        dice_loss(probs2, labels2, n_classes=C, weight=wts, tile_hint=128))
    ref2 = jax.block_until_ready(
        _dice_loss_ref(probs2, labels2.astype(jnp.int32), C, weight=wts))
    assert jnp.allclose(loss2, ref2, rtol=1e-5, atol=1e-6), (loss2, ref2)

    print("KERNEL_OK")
</pallas_src>

<mosaic_0001>
module attributes {stable_mosaic.version = 11 : i64} {
  func.func @_dice_partial_kernel(%arg0: i32, %arg1: i32, %arg2: memref<1x4x256xf32, #tpu.memory_space<vmem>>, %arg3: memref<1x1x256xi32, #tpu.memory_space<vmem>>, %arg4: memref<1x4x1xf32, #tpu.memory_space<vmem>>, %arg5: memref<1x4x1xf32, #tpu.memory_space<vmem>>, %arg6: memref<1x4x1xf32, #tpu.memory_space<vmem>>, %arg7: memref<4x256xf32, #tpu.memory_space<vmem>>, %arg8: memref<4x256xf32, #tpu.memory_space<vmem>>, %arg9: memref<4x256xf32, #tpu.memory_space<vmem>>) attributes {dimension_semantics = [#tpu.dimension_semantics<parallel>, #tpu.dimension_semantics<arbitrary>], iteration_bounds = array<i64: 2, 1>, scalar_prefetch = 0 : i64, scratch_operands = 3 : i64, tpu.core_type = #tpu.core_type<tc>, window_params = [{transform_indices = @transform_0, window_bounds = array<i64: 1, 4, 256>}, {transform_indices = @transform_1, window_bounds = array<i64: 1, 1, 256>}, {transform_indices = @transform_2, window_bounds = array<i64: 1, 4, 1>}, {transform_indices = @transform_3, window_bounds = array<i64: 1, 4, 1>}, {transform_indices = @transform_4, window_bounds = array<i64: 1, 4, 1>}]} {
    %c0_i32 = arith.constant 0 : i32
    %0 = arith.cmpi eq, %arg1, %c0_i32 : i32
    %1 = arith.extui %0 : i1 to i32
    %c0_i32_0 = arith.constant 0 : i32
    %2 = arith.cmpi ne, %1, %c0_i32_0 : i32
    scf.if %2 {
      %cst_20 = arith.constant 0.000000e+00 : f32
      %28 = vector.broadcast %cst_20 : f32 to vector<4x256xf32>
      %c0_21 = arith.constant 0 : index
      %c0_22 = arith.constant 0 : index
      %29 = vector.load %arg7[%c0_21, %c0_22] : memref<4x256xf32, #tpu.memory_space<vmem>>, vector<4x256xf32>
      tpu.vector_store %arg7[%c0_21, %c0_22], %28 {strides = array<i32>} : memref<4x256xf32, #tpu.memory_space<vmem>>, vector<4x256xf32>,
      %cst_23 = arith.constant 0.000000e+00 : f32
      %30 = vector.broadcast %cst_23 : f32 to vector<4x256xf32>
      %c0_24 = arith.constant 0 : index
      %c0_25 = arith.constant 0 : index
      %31 = vector.load %arg8[%c0_24, %c0_25] : memref<4x256xf32, #tpu.memory_space<vmem>>, vector<4x256xf32>
      tpu.vector_store %arg8[%c0_24, %c0_25], %30 {strides = array<i32>} : memref<4x256xf32, #tpu.memory_space<vmem>>, vector<4x256xf32>,
      %cst_26 = arith.constant 0.000000e+00 : f32
      %32 = vector.broadcast %cst_26 : f32 to vector<4x256xf32>
      %c0_27 = arith.constant 0 : index
      %c0_28 = arith.constant 0 : index
      %33 = vector.load %arg9[%c0_27, %c0_28] : memref<4x256xf32, #tpu.memory_space<vmem>>, vector<4x256xf32>
      tpu.vector_store %arg9[%c0_27, %c0_28], %32 {strides = array<i32>} : memref<4x256xf32, #tpu.memory_space<vmem>>, vector<4x256xf32>,
    } else {
    }
    %c0 = arith.constant 0 : index
    %c0_1 = arith.constant 0 : index
    %c0_2 = arith.constant 0 : index
    %3 = vector.load %arg2[%c0, %c0_1, %c0_2] : memref<1x4x256xf32, #tpu.memory_space<vmem>>, vector<1x4x256xf32>
    %4 = vector.shape_cast %3 : vector<1x4x256xf32> to vector<4x256xf32>
    %c0_3 = arith.constant 0 : index
    %c0_4 = arith.constant 0 : index
    %c0_5 = arith.constant 0 : index
    %5 = vector.load %arg3[%c0_3, %c0_4, %c0_5] : memref<1x1x256xi32, #tpu.memory_space<vmem>>, vector<1x1x256xi32>
    %6 = vector.shape_cast %5 : vector<1x1x256xi32> to vector<1x256xi32>
    %7 = tpu.iota {dimensions = array<i32: 0>} : vector<4x1xi32>
    %8 = vector.broadcast %6 : vector<1x256xi32> to vector<4x256xi32>
    %9 = vector.broadcast %7 : vector<4x1xi32> to vector<4x256xi32>
    %10 = arith.cmpi eq, %8, %9 : vector<4x256xi32>
    %c0_6 = arith.constant 0 : index
    %c0_7 = arith.constant 0 : index
    %11 = vector.load %arg7[%c0_6, %c0_7] : memref<4x256xf32, #tpu.memory_space<vmem>>, vector<4x256xf32>
    %cst = arith.constant 0.000000e+00 : f32
    %12 = vector.broadcast %cst : f32 to vector<4x256xf32>
    %13 = arith.select %10, %4, %12 : vector<4x256xi1>, vector<4x256xf32>
    %14 = arith.addf %11, %13 : vector<4x256xf32>
    %c0_8 = arith.constant 0 : index
    %c0_9 = arith.constant 0 : index
    %15 = vector.load %arg7[%c0_8, %c0_9] : memref<4x256xf32, #tpu.memory_space<vmem>>, vector<4x256xf32>
    tpu.vector_store %arg7[%c0_8, %c0_9], %14 {strides = array<i32>} : memref<4x256xf32, #tpu.memory_space<vmem>>, vector<4x256xf32>,
    %c0_10 = arith.constant 0 : index
    %c0_11 = arith.constant 0 : index
    %16 = vector.load %arg8[%c0_10, %c0_11] : memref<4x256xf32, #tpu.memory_space<vmem>>, vector<4x256xf32>
    %17 = arith.mulf %4, %4 : vector<4x256xf32>
    %18 = arith.addf %16, %17 : vector<4x256xf32>
    %c0_12 = arith.constant 0 : index
    %c0_13 = arith.constant 0 : index
    %19 = vector.load %arg8[%c0_12, %c0_13] : memref<4x256xf32, #tpu.memory_space<vmem>>, vector<4x256xf32>
    tpu.vector_store %arg8[%c0_12, %c0_13], %18 {strides = array<i32>} : memref<4x256xf32, #tpu.memory_space<vmem>>, vector<4x256xf32>,
    %c0_14 = arith.constant 0 : index
    %c0_15 = arith.constant 0 : index
    %20 = vector.load %arg9[%c0_14, %c0_15] : memref<4x256xf32, #tpu.memory_space<vmem>>, vector<4x256xf32>
    %21 = arith.extui %10 : vector<4x256xi1> to vector<4x256xi32>
    %22 = arith.sitofp %21 : vector<4x256xi32> to vector<4x256xf32>
    %23 = arith.addf %20, %22 : vector<4x256xf32>
    %c0_16 = arith.constant 0 : index
    %c0_17 = arith.constant 0 : index
    %24 = vector.load %arg9[%c0_16, %c0_17] : memref<4x256xf32, #tpu.memory_space<vmem>>, vector<4x256xf32>
    tpu.vector_store %arg9[%c0_16, %c0_17], %23 {strides = array<i32>} : memref<4x256xf32, #tpu.memory_space<vmem>>, vector<4x256xf32>,
    %c0_i32_18 = arith.constant 0 : i32
    %25 = arith.cmpi eq, %arg1, %c0_i32_18 : i32
    %26 = arith.extui %25 : i1 to i32
    %c0_i32_19 = arith.constant 0 : i32
    %27 = arith.cmpi ne, %26, %c0_i32_19 : i32
    scf.if %27 {
      %c0_20 = arith.constant 0 : index
      %c0_21 = arith.constant 0 : index
      %28 = vector.load %arg7[%c0_20, %c0_21] : memref<4x256xf32, #tpu.memory_space<vmem>>, vector<4x256xf32>
      %cst_22 = arith.constant dense<0.000000e+00> : vector<4xf32>
      %29 = vector.multi_reduction <add>, %28, %cst_22 [1] : vector<4x256xf32> to vector<4xf32>
      %30 = vector.shape_cast %29 : vector<4xf32> to vector<4x1xf32>
      %31 = vector.shape_cast %30 : vector<4x1xf32> to vector<1x4x1xf32>
      %c0_23 = arith.constant 0 : index
      %c0_24 = arith.constant 0 : index
      %c0_25 = arith.constant 0 : index
      %32 = vector.load %arg4[%c0_23, %c0_24, %c0_25] : memref<1x4x1xf32, #tpu.memory_space<vmem>>, vector<1x4x1xf32>
      tpu.vector_store %arg4[%c0_23, %c0_24, %c0_25], %31 {strides = array<i32>} : memref<1x4x1xf32, #tpu.memory_space<vmem>>, vector<1x4x1xf32>,
      %c0_26 = arith.constant 0 : index
      %c0_27 = arith.constant 0 : index
      %33 = vector.load %arg8[%c0_26, %c0_27] : memref<4x256xf32, #tpu.memory_space<vmem>>, vector<4x256xf32>
      %cst_28 = arith.constant dense<0.000000e+00> : vector<4xf32>
      %34 = vector.multi_reduction <add>, %33, %cst_28 [1] : vector<4x256xf32> to vector<4xf32>
      %35 = vector.shape_cast %34 : vector<4xf32> to vector<4x1xf32>
      %36 = vector.shape_cast %35 : vector<4x1xf32> to vector<1x4x1xf32>
      %c0_29 = arith.constant 0 : index
      %c0_30 = arith.constant 0 : index
      %c0_31 = arith.constant 0 : index
      %37 = vector.load %arg5[%c0_29, %c0_30, %c0_31] : memref<1x4x1xf32, #tpu.memory_space<vmem>>, vector<1x4x1xf32>
      tpu.vector_store %arg5[%c0_29, %c0_30, %c0_31], %36 {strides = array<i32>} : memref<1x4x1xf32, #tpu.memory_space<vmem>>, vector<1x4x1xf32>,
      %c0_32 = arith.constant 0 : index
      %c0_33 = arith.constant 0 : index
      %38 = vector.load %arg9[%c0_32, %c0_33] : memref<4x256xf32, #tpu.memory_space<vmem>>, vector<4x256xf32>
      %cst_34 = arith.constant dense<0.000000e+00> : vector<4xf32>
      %39 = vector.multi_reduction <add>, %38, %cst_34 [1] : vector<4x256xf32> to vector<4xf32>
      %40 = vector.shape_cast %39 : vector<4xf32> to vector<4x1xf32>
      %41 = vector.shape_cast %40 : vector<4x1xf32> to vector<1x4x1xf32>
      %c0_35 = arith.constant 0 : index
      %c0_36 = arith.constant 0 : index
      %c0_37 = arith.constant 0 : index
      %42 = vector.load %arg6[%c0_35, %c0_36, %c0_37] : memref<1x4x1xf32, #tpu.memory_space<vmem>>, vector<1x4x1xf32>
      tpu.vector_store %arg6[%c0_35, %c0_36, %c0_37], %41 {strides = array<i32>} : memref<1x4x1xf32, #tpu.memory_space<vmem>>, vector<1x4x1xf32>,
    } else {
    }
    return
  }
  func.func @transform_0(%arg0: i32, %arg1: i32) -> (i32, i32, i32) {
    %c0_i32 = arith.constant 0 : i32
    %c0_i32_0 = arith.constant 0 : i32
    return %arg0, %c0_i32, %arg1 : i32, i32, i32
  }
  func.func @transform_1(%arg0: i32, %arg1: i32) -> (i32, i32, i32) {
    %c0_i32 = arith.constant 0 : i32
    %c0_i32_0 = arith.constant 0 : i32
    return %arg0, %c0_i32, %arg1 : i32, i32, i32
  }
  func.func @transform_2(%arg0: i32, %arg1: i32) -> (i32, i32, i32) {
    %c0_i32 = arith.constant 0 : i32
    %c0_i32_0 = arith.constant 0 : i32
    %c0_i32_1 = arith.constant 0 : i32
    return %arg0, %c0_i32, %c0_i32_0 : i32, i32, i32
  }
  func.func @transform_3(%arg0: i32, %arg1: i32) -> (i32, i32, i32) {
    %c0_i32 = arith.constant 0 : i32
    %c0_i32_0 = arith.constant 0 : i32
    %c0_i32_1 = arith.constant 0 : i32
    return %arg0, %c0_i32, %c0_i32_0 : i32, i32, i32
  }
  func.func @transform_4(%arg0: i32, %arg1: i32) -> (i32, i32, i32) {
    %c0_i32 = arith.constant 0 : i32
    %c0_i32_0 = arith.constant 0 : i32
    %c0_i32_1 = arith.constant 0 : i32
    return %arg0, %c0_i32, %c0_i32_0 : i32, i32, i32
  }
}

</mosaic_0001>

<bundles_post_ra>
// kernel: tpu_custom_call.1
= control target key start
LH: loop header
LB: loop body
LE: loop exit
PB: predicated region body
PF: predicated region fallthrough
CT: control target
= control target key end

     0   :  { %10 = vsyncpa [#allocation6], 0  ;;  %s950_s0 = inlined_call_operand.hbm [shape: f32[2,4,256], index: 0, kind: input, shape index: {}]   ;;  %s951_s1 = inlined_call_operand.hbm [shape: s32[2,1,256], index: 1, kind: input, shape index: {}]   ;;  %s952_s2 = inlined_call_operand.vmem [shape: f32[2,4,1], index: 2, kind: output, shape index: {0}]   ;;  %s953_s3 = inlined_call_operand.vmem [shape: f32[2,4,1], index: 3, kind: output, shape index: {1}]   ;;  %s954_s4 = inlined_call_operand.vmem [shape: f32[2,4,1], index: 4, kind: output, shape index: {2}]  }
   0x1   :  { %12 = vsyncpa [#allocation6 + $0x1], 0 }
   0x2   :  { %13 = vsyncpa [#allocation8], 0 }
   0x3   :  { %15 = vsyncpa [#allocation8 + $0x1], 0  ;;  %s772_s15 = smov 0   ;;  %s774_s16 = smov 0  }
   0x4   :  { %s776_s17 = smov 0   ;;  %s778_s18 = smov 0  }
   0x5   :  { %s780_s19 = smov 0   ;;  %s782_s20 = smov 0  }
   0x6 LB: > { %s542_s21 = sadd.s32 4294967295, %s742_s20   ;;  %s33_s22 = sadd.s32 1, %s738_s19  ;;  %s742_s20 = sphi %s782_s20, %s21_s20   ;;  %s738_s19 = sphi %s780_s19, %s968_s19   ;;  %s734_s18 = sphi %s778_s18, %s967_s18   ;;  %s730_s17 = sphi %s776_s17, %s966_s17   ;;  %s726_s16 = sphi %s774_s16, %s965_s16   ;;  %s722_s15 = sphi %s772_s15, %s964_s15  }
   0x7   : > { %p35_p0 = scmp.ge.s32.totalorder %s33_s22, 2  ;;  %s42_s23 = sadd.s32 1, %s730_s17 }
   0x8   : > { %p49_p1 = scmp.ne.s32.totalorder %s730_s17, %s726_s16  ;;  %p50_p2 = scmp.eq.s32.totalorder %s742_s20, 0 }
   0x9   : > { %s970_s22 = smov (%p35_p0, %s33_s22), 0  ;;  %p55_p4 = scmp.ne.s32.totalorder %s726_s16, %s722_s15 }
   0xa   : > { %p808_p3 = por %p50_p2, %p49_p1  ;;  %s37_s25 = ssub.s32 %s738_s19, %s970_s22 }
   0xb   : > { %p56_p5 = scmp.eq.s32.totalorder %s542_s21, 0  ;;  %p40_p6 = scmp.eq.s32.totalorder %s37_s25, 0 }
   0xc   : > { %p577_p8 = scmp.lt.s32.totalorder %s742_s20, 2  ;;  %s824_s28 = sand.u32 1, %s730_s17  }
   0xd   : > { %p815_p7 = por %p56_p5, %p55_p4  ;;  %s562_s29 = sshll.u32 %s738_s19, 7 }
   0xe   : > { %s821_s27 = scalar_select %p40_p6, %s730_s17, %s42_s23  }
   0xf   : > { %s957_s26 = scalar_select %p815_p7, 1, 0 }
  0x10   : > { %s546_s30 = sshll.u32 %s824_s28, 3  ;;  %s831_s7 = scalar_lea.hbm %s950_s0, %s562_s29 }
  0x11   : > { %s189_s8 = scalar_lea.vmem [#allocation5], %s546_s30  ;;  %p835_p9 = pnand %p577_p8, %p808_p3 }
  0x12   : > { %s199_s9 = sshll.u32 %s189_s8, 4  ;;  %s186_s11 = scalar_lea.sflag [#allocation6], %s824_s28  ;;  %s839_s9 = int_to_ptr.vmem [resolvable:$true] %s199_s9 }
  0x13   : > { %s628_s12 = scalar_lea.hbm %s831_s7, 128  ;;  %p630_p13 = pneg %p835_p9 }
  0x14   : > { %p629_p12 = scmp.ne.s32.totalorder %s831_s7, %s628_s12  ;;  %s633_s15 = scalar_lea.hbm %s950_s0, 256 }
  0x15   : > { %p634_p2 = scmp.lt.u32.totalorder %s831_s7, %s950_s0  ;;  %p635_p3 = scmp.lt.u32.totalorder %s633_s15, %s628_s12 }
  0x16   : > { %p631_p0 = pnand %p630_p13, %p629_p12  ;;  %p637_p5 = scmp.lt.u32.totalorder %s628_s12, %s831_s7 }
  0x17   : > { %p636_p4 = por %p635_p3, %p634_p2 }
  0x18   : > { %p632_p1 = pneg %p631_p0 }
  0x19   : > { %p638_p6 = por %p637_p5, %p636_p4 }
  0x1b   : > { %p639_p8 = pnand %p638_p6, %p632_p1 }
  0x1d   : > { %642 = shalt.err (!%p639_p8)
}
  0x1e   : > { %s643_s24 = scalar_lea.vmem %s839_s9, 128  ;;  %s744_s25 = smov [#allocation5]  }
  0x1f   : > { %p644_p12 = scmp.ne.s32.totalorder %s839_s9, %s643_s24  ;;  %s648_s29 = sshll.u32 %s744_s25, 4  ;;  %s649_s29 = int_to_ptr.vmem [resolvable:$false] %s648_s29 }
  0x20   : > { %s650_s30 = scalar_lea.vmem %s649_s29, 256  ;;  %p651_p11 = scmp.lt.s32.totalorder %s839_s9, %s649_s29 }
  0x21   : > { %p646_p0 = pnand %p644_p12, %p630_p13  ;;  %p652_p2 = scmp.lt.s32.totalorder %s650_s30, %s643_s24 }
  0x23   : > { %p647_p10 = pneg %p646_p0  ;;  %p653_p3 = por %p652_p2, %p651_p11 }
  0x25   : > { %p654_p4 = pnand %p653_p3, %p647_p10 }
  0x27   : > { %657 = shalt.err (!%p654_p4)
}
  0x28   : > { %573 = dma.hbm_to_vmem [thread:$0]  (!%p835_p9), %s831_s7, 128, %s839_s9, %s186_s11  }
  0x29   : > { %p959_p1 = scmp.lt.s32.totalorder %s742_s20, 3  ;;  %p960_p5 = scmp.ge.s32.totalorder %s742_s20, 1 }
  0x2a   : > { %s549_s6 = sshll.u32 %s824_s28, 1  ;;  %s563_s8 = sshll.u32 %s738_s19, 5 }
  0x2b   : > { %p873_p6 = pnand %p960_p5, %p959_p1  ;;  %s882_s14 = scalar_lea.hbm %s951_s1, %s563_s8 }
  0x2c   : > { %s210_s15 = scalar_lea.vmem [#allocation7], %s549_s6  ;;  %s207_s7 = scalar_lea.sflag [#allocation8], %s824_s28 }
  0x2d   : > { %s961_s5 = scalar_select %p873_p6, 1, 0 }
  0x2e   : > { %s220_s21 = sshll.u32 %s210_s15, 4  ;;  %s658_s9 = scalar_lea.hbm %s882_s14, 32  ;;  %s221_s21 = int_to_ptr.vmem [resolvable:$true] %s220_s21 }
  0x2f   : > { %p659_p10 = scmp.ne.s32.totalorder %s882_s14, %s658_s9  ;;  %s663_s24 = scalar_lea.hbm %s951_s1, 64 }
  0x30   : > { %p664_p12 = scmp.lt.u32.totalorder %s882_s14, %s951_s1  ;;  %p665_p0 = scmp.lt.u32.totalorder %s663_s24, %s658_s9 }
  0x31   : > { %p661_p11 = pnand %p659_p10, %p630_p13  ;;  %p667_p3 = scmp.lt.u32.totalorder %s658_s9, %s882_s14 }
  0x32   : > { %p666_p2 = por %p665_p0, %p664_p12 }
  0x33   : > { %p662_p8 = pneg %p661_p11 }
  0x34   : > { %p668_p4 = por %p667_p3, %p666_p2 }
  0x36   : > { %p669_p1 = pnand %p668_p4, %p662_p8 }
  0x38   : > { %672 = shalt.err (!%p669_p1)
}
  0x39   : > { %s673_s28 = scalar_lea.vmem %s221_s21, 32  ;;  %s745_s30 = smov [#allocation7]  }
  0x3a   : > { %p674_p5 = scmp.ne.s32.totalorder %s221_s21, %s673_s28  ;;  %s678_s6 = sshll.u32 %s745_s30, 4  ;;  %s679_s6 = int_to_ptr.vmem [resolvable:$false] %s678_s6 }
  0x3b   : > { %s680_s8 = scalar_lea.vmem %s679_s6, 64  ;;  %p681_p7 = scmp.lt.s32.totalorder %s221_s21, %s679_s6 }
  0x3c   : > { %p676_p10 = pnand %p674_p5, %p630_p13  ;;  %p682_p6 = scmp.lt.s32.totalorder %s680_s8, %s673_s28 }
  0x3e   : > { %p677_p11 = pneg %p676_p10  ;;  %p683_p0 = por %p682_p6, %p681_p7 }
  0x40   : > { %p684_p12 = pnand %p683_p0, %p677_p11 }
  0x42   : > { %687 = shalt.err (!%p684_p12)
}
  0x43   : > { %576 = dma.hbm_to_vmem [thread:$0]  (!%p835_p9), %s882_s14, 32, %s221_s21, %s207_s7  }
  0x44   : > { %p962_p8 = scmp.ne.s32.totalorder %s961_s5, 0 }
  0x45   : > { %s231_s12 = sand.u32 (!%p962_p8), 1, %s726_s16   ;;  %p963_p13 = scmp.ne.s32.totalorder (!%p962_p8), %s957_s26, 0 }
  0x46   : > { %229 = sbr.rel (%p962_p8) target bundleno = 243 (0xf3), region = 28  ;;  %s553_s13 = sshll.u32 (!%p962_p8), %s231_s12, 3 }
  0x47   : > { %s232_s15 = scalar_lea.sflag (!%p962_p8), [#allocation6], %s231_s12  ;;  %s235_s9 = scalar_lea.vmem (!%p962_p8), [#allocation5], %s553_s13 }
  0x4d   : > { %713 = dma.done.wait (%p963_p13), %s232_s15, 128  }
  0x4e   : > { %715 = vsyncadd (%p963_p13), %s232_s15, 4294967168  ;;  %s554_s11 = sshll.u32 %s231_s12, 1  ;;  %s241_s23 = scalar_lea.sflag [#allocation8], %s231_s12 }
  0x4f   : > { %s244_s10 = scalar_lea.vmem [#allocation7], %s554_s11 }
  0x50   : > { %717 = dma.done.wait (%p963_p13), %s241_s23, 32  }
  0x51   : > { %719 = vsyncadd (%p963_p13), %s241_s23, 4294967264  ;;  %v304_v0 = vlaneseq  ;;  %v302_v4 = vld [vmem:[%s235_s9] sm:$0xff]  ;;  %v303_v5 = vld [vmem:[%s244_s10] sm:$0x3]  ;;  %vm350_vm2 = vcmask 1043456   ;;  %v746_v13 = vmov 0.0  }
  0x52   : > { %v318_v8 = vcombine.high %v302_v4, %v302_v4  ;;  %v329_v9 = vmul.f32 %v302_v4, %v302_v4  ;;  %p283_p7 = scmp.lt.s32.totalorder %s734_s18, 1  ;;  %vm356_vm3 = vcmask 3072  }
  0x53   : > { %v305_v1 = vshrl.u32 %v304_v0, 7 }
  0x54   : > { %v360_v10 = vcombine.high %v329_v9, %v329_v9  ;;  %v362_v20 = vsel %vm350_vm2, %v329_v9, 0.0  ;;  %s972_s18 = smov (!%p283_p7, %s734_s18), 1 }
  0x55   : > { %v308_v2 = vsub.s32 0, %v305_v1  ;;  %v312_v3 = vsub.s32 1, %v305_v1  ;;  %s555_s26 = sshll.u32 %s972_s18, 2 }
  0x56   : > { %v363_v21 = vsel %vm350_vm2, %v360_v10, 0.0  ;;  %s286_s21 = scalar_lea.vmem %s952_s2, %s555_s26  ;;  %s294_s25 = scalar_lea.vmem %s954_s4, %s555_s26 }
  0x57   : > { %v309_v6 = vrot.slane %v303_v5, %v308_v2  ;;  %v313_v7 = vrot.slane %v303_v5, %v312_v3  ;;  %v364_v28 = vadd.f32 %v363_v21, %v362_v20  ;;  %s290_s30 = scalar_lea.vmem %s953_s3, %s555_s26 }
  0x59   : > { %vm314_vm0 = vcmp.eq.s32.totalorder %v309_v6, %v305_v1  ;;  %vm315_vm1 = vcmp.eq.s32.totalorder %v313_v7, %v305_v1 }
  0x5a   : > { %v320_v11 = vsel %vm314_vm0, %v302_v4, 0.0  ;;  %v321_v12 = vsel %vm315_vm1, %v318_v8, 0.0  ;;  %v558_v14 = vsel %vm314_vm0, 1.0, %v746_v13  ;;  %v559_v15 = vsel %vm315_vm1, 1.0, %v746_v13 }
  0x5b   : > { %v324_v16 = vcombine.low %v320_v11, %v321_v12  ;;  %v564_v17 = vcombine.low %v321_v12, %v321_v12  ;;  %v339_v18 = vcombine.low %v558_v14, %v559_v15  ;;  %v565_v19 = vcombine.low %v559_v15, %v559_v15 }
  0x5d   : > { %v351_v22 = vsel %vm350_vm2, %v324_v16, 0.0  ;;  %v352_v23 = vsel %vm350_vm2, %v564_v17, 0.0  ;;  %v372_v24 = vsel %vm350_vm2, %v339_v18, 0.0  ;;  %v373_v25 = vsel %vm350_vm2, %v565_v19, 0.0 }
  0x5e   : > { %v353_v26 = vadd.f32 %v352_v23, %v351_v22  ;;  %v374_v27 = vadd.f32 %v373_v25, %v372_v24 }
  0x60   : > { %354 = vadd.xlane.f32.xlu0 %v353_v26  ;;  %375 = vadd.xlane.f32.xlu1 %v374_v27 }
  0x64   : > { %365 = vadd.xlane.f32.xlu0 %v364_v28 }
  0xed   : > { %v355_v29 = vpop.xlane.xlu0 %354  ;;  %v376_v30 = vpop.xlane.xlu1 %375 }
  0xee   : > { %357 = vst.msk [vmem:[%s286_s21] sm:$0xf] %vm356_vm3, %v355_v29  ;;  %377 = vst.msk [vmem:[%s294_s25] sm:$0xf] %vm356_vm3, %v376_v30 }
  0xf1   : > { %v366_v31 = vpop.xlane.xlu0 %365 }
  0xf2   : > { %367 = vst.msk [vmem:[%s290_s30] sm:$0xf] %vm356_vm3, %v366_v31 }
  0xf3 PF: > { %s21_s20 = sadd.s32 1, %s742_s20   ;;  %s964_s15 = smov %s726_s16 }
  0xf4   : > { %p18_p9 = scmp.ge.s32.totalorder %s21_s20, 4   ;;  %s965_s16 = smov %s730_s17 }
  0xf5   : > { %s966_s17 = smov %s821_s27  ;;  %s967_s18 = smov %s738_s19 }
  0xf6   : > { %s968_s19 = smov %s970_s22  ;;  %20 = sbr.rel (!%p18_p9) target bundleno = 6 (0x6), region = 113 }
  0xfd   :  { %425 = vsyncpa [#allocation6], 1 }
  0xfe   :  { %427 = vsyncpa [#allocation6 + $0x1], 1 }
  0xff   :  { %428 = vsyncpa [#allocation8], 1 }
 0x100   :  { %430 = vsyncpa [#allocation8 + $0x1], 1 }

</bundles_post_ra>
